<compile_context>
chip_gen: v7x
topology: tpu7x:2x2x1
jax: 0.10.0
libtpu: 0.0.40
codegen_flags: <defaults>
</compile_context>

<pallas_src>
import jax
import jax.numpy as jnp
from jax.experimental import pallas as pl
from jax.experimental.pallas import tpu as pltpu

BN_EPS = 1e-5
_LANE = 128
_MAX_BLOCK_B = 2048


def _round_up(x, m):
    return (x + m - 1) // m * m


def _vmem_limit_bytes():
    """Per-generation scoped-VMEM request (v5e/v6e: 128 MiB physical, v7x: 64 MiB/TC)."""
    phys = None
    try:
        phys = getattr(pltpu.get_tpu_info(), "vmem_capacity_bytes", None)
    except Exception:  # not queryable -> conservative default
        phys = None
    if phys is None:
        return 32 * 1024 * 1024
    if phys >= 100 * 1024 * 1024:       # v5e / v6e (128 MiB physical)
        return 64 * 1024 * 1024
    return 40 * 1024 * 1024             # v7x (64 MiB physical per TensorCore)


def _auto_block_b(B, D_in, x_itemsize, H, w_itemsize, vmem_limit):
    """Largest batch tile whose double-buffered x stream fits the VMEM budget."""
    if B <= _LANE:
        # Tiny batch: one tile exactly covering the (sublane-aligned) batch.
        return _round_up(max(B, 1), 8)
    lanes = _round_up(max(D_in, 1), _LANE)          # x tile is lane-padded to 128
    # Resident, single-buffered operands: w1 + small bias/weight tiles.
    resident = H * lanes * w_itemsize + 2 * _round_up(H, 8) * _LANE * 4
    budget = int(vmem_limit * 0.75) - resident      # leave headroom for scratch/regalloc
    per_row = 2 * lanes * x_itemsize + 2 * 8 * 4    # x (2 bufs) + out row (2 bufs, padded)
    cand = max(budget, 0) // per_row
    cand = max(_LANE, min(_MAX_BLOCK_B, (cand // _LANE) * _LANE))
    return min(cand, _round_up(B, _LANE))           # never bigger than the padded batch


def _resident_spec(shape):
    """VMEM-resident operand: constant index map + single buffering (no re-fetch)."""
    index_map = lambda i, _n=len(shape): (0,) * _n
    try:
        return pl.BlockSpec(shape, index_map, pipeline_mode=pl.Buffered(1))
    except TypeError:  # BlockSpec without pipeline_mode support: default double-buffering
        return pl.BlockSpec(shape, index_map)


def _embedding_kernel(x_ref, w1_ref, b1_ref, w2_ref, b2_ref, out_ref):
    """One batch tile: x (TB, D_in) -> out (1, 1, TB), computed transposed.

    w1 (H, D_in)  bf16, BatchNorm already folded in, VMEM-resident
    b1 (H, 1)     f32, VMEM-resident
    w2 (H, 1)     f32, VMEM-resident (output_dimension == 1)
    b2 (1, 1)     f32 scalar in SMEM
    """
    # If the caller streams bf16 x this cast is a no-op (halves the dominant HBM traffic).
    x = x_ref[...].astype(w1_ref.dtype)                        # (TB, D_in)

    # Layer 1 on the MXU, produced transposed: h[j, b] = sum_d w1[j, d] * x[b, d].
    # Minor-dim contraction on both operands -- same pattern as flash attention's q @ k^T.
    h = jax.lax.dot_general(
        w1_ref[...], x,
        dimension_numbers=(((1,), (1,)), ((), ())),
        preferred_element_type=jnp.float32)                    # (H, TB) f32
    h = jnp.maximum(h + b1_ref[...], 0.0)                      # bias + ReLU (dropout = id)

    # Layer 2 (D_out == 1): VPU multiply + sublane reduce -> lane-dense (1, TB) row.
    # TODO(synk): if a bundle dump shows VALU saturating for large H on v6e/v7x, switch to
    # an M=1 MXU dot (w2^T (1,H) @ h (H,TB)) -- the MXU slot is otherwise idle after layer 1.
    y = jnp.sum(h * w2_ref[...], axis=0, keepdims=True) + b2_ref[0, 0]
    out_ref[...] = y.reshape(out_ref.shape).astype(out_ref.dtype)


def embedding_network_forward(x, params, *, block_b=None):
    """x: [B, D_in] (f32 or bf16), params from prepare_params(). Returns squeezed [B]."""
    B, D_in = x.shape
    H = params["w1"].shape[0]
    assert params["w1"].shape == (H, D_in)
    assert params["w2"].shape == (H, 1), "kernel is specialized to output_dimension == 1"

    vmem_limit = _vmem_limit_bytes()
    if block_b is None:
        block_b = _auto_block_b(B, D_in, x.dtype.itemsize, H,
                                params["w1"].dtype.itemsize, vmem_limit)
    # Multiples of 128 keep the (1, TB) output rows fully lane-dense (unmasked vst);
    # a single sublane-aligned tile is allowed for tiny batches.
    assert block_b % 8 == 0

    # Ragged batch: no jnp.pad (that would re-stream the whole B x D_in array through HBM).
    # Pallas clips the final tile's input DMA to B rows; garbage lanes are sliced off below.
    num_tiles = pl.cdiv(B, block_b)

    y = pl.pallas_call(
        _embedding_kernel,
        out_shape=jax.ShapeDtypeStruct((num_tiles, 1, block_b), jnp.float32),
        grid=(num_tiles,),
        in_specs=[
            pl.BlockSpec((block_b, D_in), lambda i: (i, 0)),      # x: streamed per tile
            _resident_spec((H, D_in)),                            # w1: resident, 1-buffered
            _resident_spec((H, 1)),                               # b1: resident, 1-buffered
            _resident_spec((H, 1)),                               # w2: resident, 1-buffered
            pl.BlockSpec(memory_space=pltpu.MemorySpace.SMEM),    # b2: scalar in SMEM
        ],
        out_specs=pl.BlockSpec((1, 1, block_b), lambda i: (i, 0, 0)),  # lane-dense rows
        compiler_params=pltpu.CompilerParams(
            # TODO(synk): on v7x, verify in a trace that both TensorCores take batch tiles;
            # if not, switch to (pltpu.CORE_PARALLEL,) or pl.core_map over a TC mesh.
            dimension_semantics=("parallel",),
            vmem_limit_bytes=vmem_limit,
        ),
    )(x, params["w1"], params["b1"], params["w2"], params["b2"])

    # Matches the module's predicted_fitness.squeeze().
    return jnp.squeeze(y.reshape(num_tiles * block_b)[:B])


def init_params(key, input_dimension, hidden_dimension, output_dimension):
    """Raw params mirroring the torch module's __init__ (torch layouts, f32)."""
    k1, k2, k3, k4 = jax.random.split(key, 4)

    def xavier_uniform(k, fan_out, fan_in):
        bound = jnp.sqrt(6.0 / (fan_in + fan_out))
        return jax.random.uniform(k, (fan_out, fan_in), jnp.float32, -bound, bound)

    def linear_bias(k, fan_in, fan_out):
        bound = 1.0 / jnp.sqrt(float(fan_in))
        return jax.random.uniform(k, (fan_out,), jnp.float32, -bound, bound)

    return {
        # BatchNorm1d defaults: gamma=1, beta=0, running_mean=0, running_var=1.
        "bn_gamma": jnp.ones((input_dimension,), jnp.float32),
        "bn_beta": jnp.zeros((input_dimension,), jnp.float32),
        "bn_mean": jnp.zeros((input_dimension,), jnp.float32),
        "bn_var": jnp.ones((input_dimension,), jnp.float32),
        "w1": xavier_uniform(k1, hidden_dimension, input_dimension),   # (H, D_in)
        "b1": linear_bias(k2, input_dimension, hidden_dimension),      # (H,)
        "w2": xavier_uniform(k3, output_dimension, hidden_dimension),  # (D_out, H)
        "b2": linear_bias(k4, hidden_dimension, output_dimension),     # (D_out,)
    }


def prepare_params(raw, matmul_dtype=jnp.bfloat16):
    """One-time prep: fold BatchNorm (eval) into Linear-1 and lay out for the kernel.

    Pass matmul_dtype=jnp.float32 to keep w1 full precision (it is VMEM-resident, so the
    cost is negligible); only the streamed x dtype matters for bandwidth.
    """
    scale = raw["bn_gamma"] * jax.lax.rsqrt(raw["bn_var"] + BN_EPS)    # (D_in,)
    shift = raw["bn_beta"] - raw["bn_mean"] * scale                    # (D_in,)
    w1_folded = raw["w1"] * scale[None, :]                             # (H, D_in)
    b1_folded = raw["b1"] + raw["w1"] @ shift                          # (H,)
    hidden = raw["w1"].shape[0]
    return {
        "w1": w1_folded.astype(matmul_dtype),                          # (H, D_in)
        "b1": b1_folded.reshape(hidden, 1).astype(jnp.float32),        # (H, 1)
        "w2": raw["w2"].reshape(hidden, 1).astype(jnp.float32),        # (H, 1)
        "b2": raw["b2"].reshape(1, 1).astype(jnp.float32),             # (1, 1) -> SMEM
    }


if __name__ == "__main__":
    batch = 8
    input_dimension = 16
    hidden_dimension = 32
    output_dimension = 1
    dropout_rate = 0.1   # identity at inference

    key = jax.random.PRNGKey(0)
    kx, kp = jax.random.split(key)
    x = jax.random.normal(kx, (batch, input_dimension), jnp.float32)

    raw = init_params(kp, input_dimension, hidden_dimension, output_dimension)
    params = prepare_params(raw)

    out = embedding_network_forward(x, params)
    out = jax.block_until_ready(out)
    assert out.shape == (batch,), out.shape

    # (1) Exact-path reference: same folded weights / bf16 operands / f32 accumulate.
    xb = x.astype(params["w1"].dtype)
    h = jax.lax.dot_general(params["w1"], xb, (((1,), (1,)), ((), ())),
                            preferred_element_type=jnp.float32)
    h = jnp.maximum(h + params["b1"], 0.0)
    ref_exact = jnp.sum(h * params["w2"], axis=0) + params["b2"][0, 0]
    assert jnp.allclose(out, ref_exact, atol=2e-3, rtol=2e-3)

    # (2) Semantic reference: f32 BatchNorm(eval) -> Linear -> ReLU -> Linear -> squeeze.
    xn = (x - raw["bn_mean"]) * jax.lax.rsqrt(raw["bn_var"] + BN_EPS)
    xn = xn * raw["bn_gamma"] + raw["bn_beta"]
    hf = jnp.maximum(xn @ raw["w1"].T + raw["b1"], 0.0)
    ref_f32 = jnp.squeeze(hf @ raw["w2"].T + raw["b2"])
    assert jnp.allclose(out, ref_f32, atol=1e-1, rtol=5e-2)

    print("KERNEL_OK")
</pallas_src>

<mosaic_0001>
module attributes {stable_mosaic.version = 11 : i64} {
  func.func @_embedding_kernel(%arg0: i32, %arg1: memref<8x16xf32, #tpu.memory_space<vmem>>, %arg2: memref<32x16xbf16, #tpu.memory_space<vmem>>, %arg3: memref<32x1xf32, #tpu.memory_space<vmem>>, %arg4: memref<32x1xf32, #tpu.memory_space<vmem>>, %arg5: memref<1x1xf32, #tpu.memory_space<smem>>, %arg6: memref<1x1x8xf32, #tpu.memory_space<vmem>>) attributes {dimension_semantics = [#tpu.dimension_semantics<parallel>], iteration_bounds = array<i64: 1>, scalar_prefetch = 0 : i64, scratch_operands = 0 : i64, tpu.core_type = #tpu.core_type<tc>, window_params = [{transform_indices = @transform_0, window_bounds = array<i64: 8, 16>}, {pipeline_mode = #tpu.pipeline_mode<synchronous>, transform_indices = @transform_1, window_bounds = array<i64: 32, 16>}, {pipeline_mode = #tpu.pipeline_mode<synchronous>, transform_indices = @transform_2, window_bounds = array<i64: 32, 1>}, {pipeline_mode = #tpu.pipeline_mode<synchronous>, transform_indices = @transform_3, window_bounds = array<i64: 32, 1>}, {transform_indices = @transform_4, window_bounds = array<i64: 1, 1>}, {transform_indices = @transform_5, window_bounds = array<i64: 1, 1, 8>}]} {
    %c0 = arith.constant 0 : index
    %c0_0 = arith.constant 0 : index
    %0 = vector.load %arg1[%c0, %c0_0] : memref<8x16xf32, #tpu.memory_space<vmem>>, vector<8x16xf32>
    %1 = arith.truncf %0 : vector<8x16xf32> to vector<8x16xbf16>
    %c0_1 = arith.constant 0 : index
    %c0_2 = arith.constant 0 : index
    %2 = vector.load %arg2[%c0_1, %c0_2] : memref<32x16xbf16, #tpu.memory_space<vmem>>, vector<32x16xbf16>
    %cst = arith.constant dense<0.000000e+00> : vector<32x8xf32>
    %3 = tpu.matmul %2, %1, %cst {dimension_numbers = #tpu.dot_dimension_numbers<[1], [1], [0], [0], [0, 0, 1, 0], [], []>} : vector<32x16xbf16>, vector<8x16xbf16>, vector<32x8xf32> -> vector<32x8xf32>
    %c0_3 = arith.constant 0 : index
    %c0_4 = arith.constant 0 : index
    %4 = vector.load %arg3[%c0_3, %c0_4] : memref<32x1xf32, #tpu.memory_space<vmem>>, vector<32x1xf32>
    %5 = vector.broadcast %4 : vector<32x1xf32> to vector<32x8xf32>
    %6 = arith.addf %3, %5 : vector<32x8xf32>
    %cst_5 = arith.constant 0.000000e+00 : f32
    %7 = vector.broadcast %cst_5 : f32 to vector<32x8xf32>
    %8 = arith.maximumf %6, %7 : vector<32x8xf32>
    %c0_6 = arith.constant 0 : index
    %c0_7 = arith.constant 0 : index
    %9 = vector.load %arg4[%c0_6, %c0_7] : memref<32x1xf32, #tpu.memory_space<vmem>>, vector<32x1xf32>
    %10 = vector.broadcast %9 : vector<32x1xf32> to vector<32x8xf32>
    %11 = arith.mulf %8, %10 : vector<32x8xf32>
    %cst_8 = arith.constant dense<0.000000e+00> : vector<8xf32>
    %12 = vector.multi_reduction <add>, %11, %cst_8 [0] : vector<32x8xf32> to vector<8xf32>
    %13 = vector.shape_cast %12 : vector<8xf32> to vector<1x8xf32>
    %c0_9 = arith.constant 0 : index
    %c0_10 = arith.constant 0 : index
    %14 = memref.load %arg5[%c0_9, %c0_10] : memref<1x1xf32, #tpu.memory_space<smem>>
    %15 = vector.broadcast %14 : f32 to vector<1x8xf32>
    %16 = arith.addf %13, %15 : vector<1x8xf32>
    %17 = vector.shape_cast %16 : vector<1x8xf32> to vector<1x1x8xf32>
    %c0_11 = arith.constant 0 : index
    %c0_12 = arith.constant 0 : index
    %c0_13 = arith.constant 0 : index
    %18 = vector.load %arg6[%c0_11, %c0_12, %c0_13] : memref<1x1x8xf32, #tpu.memory_space<vmem>>, vector<1x1x8xf32>
    tpu.vector_store %arg6[%c0_11, %c0_12, %c0_13], %17 {strides = array<i32>} : memref<1x1x8xf32, #tpu.memory_space<vmem>>, vector<1x1x8xf32>,
    return
  }
  func.func @transform_0(%arg0: i32) -> (i32, i32) {
    %c0_i32 = arith.constant 0 : i32
    %c0_i32_0 = arith.constant 0 : i32
    return %arg0, %c0_i32 : i32, i32
  }
  func.func @transform_1(%arg0: i32) -> (i32, i32) {
    %c0_i32 = arith.constant 0 : i32
    %c0_i32_0 = arith.constant 0 : i32
    %c0_i32_1 = arith.constant 0 : i32
    return %c0_i32, %c0_i32_0 : i32, i32
  }
  func.func @transform_2(%arg0: i32) -> (i32, i32) {
    %c0_i32 = arith.constant 0 : i32
    %c0_i32_0 = arith.constant 0 : i32
    %c0_i32_1 = arith.constant 0 : i32
    return %c0_i32, %c0_i32_0 : i32, i32
  }
  func.func @transform_3(%arg0: i32) -> (i32, i32) {
    %c0_i32 = arith.constant 0 : i32
    %c0_i32_0 = arith.constant 0 : i32
    %c0_i32_1 = arith.constant 0 : i32
    return %c0_i32, %c0_i32_0 : i32, i32
  }
  func.func @transform_4(%arg0: i32) -> (i32, i32) {
    %c0_i32 = arith.constant 0 : i32
    %c0_i32_0 = arith.constant 0 : i32
    %c0_i32_1 = arith.constant 0 : i32
    return %c0_i32, %c0_i32_0 : i32, i32
  }
  func.func @transform_5(%arg0: i32) -> (i32, i32, i32) {
    %c0_i32 = arith.constant 0 : i32
    %c0_i32_0 = arith.constant 0 : i32
    %c0_i32_1 = arith.constant 0 : i32
    return %arg0, %c0_i32, %c0_i32_0 : i32, i32, i32
  }
}

</mosaic_0001>

<bundles_post_ra>
// kernel: tpu_custom_call.1
= control target key start
LH: loop header
LB: loop body
LE: loop exit
PB: predicated region body
PF: predicated region fallthrough
CT: control target
= control target key end

     0   :  { %vm63_vm0 = vcmask 130048   ;;  %v231_v3 = vmov 0   ;;  %s315_s0 = inlined_call_operand.vmem [shape: f32[8,16], index: 0, kind: input, shape index: {}]   ;;  %s316_s1 = inlined_call_operand.vmem [shape: bf16[32,16], index: 1, kind: input, shape index: {}]   ;;  %s317_s2 = inlined_call_operand.vmem [shape: f32[32,1], index: 2, kind: input, shape index: {}]   ;;  %s318_s3 = inlined_call_operand.vmem [shape: f32[32,1], index: 3, kind: input, shape index: {}]   ;;  %s319_s4 = inlined_call_operand.<no memory space> [shape: f32[1,1], index: 4, kind: input, shape index: {}]   ;;  %s320_s5 = inlined_call_operand.hbm [shape: f32[1,1,8], index: 5, kind: output, shape index: {}]  }
   0x1   :  { %v23_v0 = vld [vmem:[%s315_s0] sm:$0xff]  ;;  %203 = vset.pattern.permute.xlu0 %v231_v3  ;;  %204 = vset.pattern.permute.xlu1 %v231_v3  ;;  %v31_v5 = vld [vmem:[%s317_s2 + $0x10] sm:$0xff]  ;;  %v30_v7 = vld [vmem:[%s317_s2 + $0x8] sm:$0xff] }
   0x2   :  { %v24_v1 = vpack.c.bf16 %v23_v0, %v23_v0  ;;  %v205_v2 = vld [vmem:[%s316_s1] sm:$0xff]   ;;  %45 = vperm.xlu1 %204, %v31_v5  }
   0x3   :  { %v29_v4 = vld [vmem:[%s317_s2] sm:$0xff]  ;;  %196 = vmatprep.mubr.msk.bf16.mxu0 %vm63_vm0, %v205_v2 }
   0x4   :  { %200 = vmatprep.subr.msk.bf16.mxu0 %vm63_vm0, %v24_v1  ;;  %v71_v6 = vsel %vm63_vm0, %v24_v1, 0  ;;  %35 = vperm.xlu0 %203, %v29_v4  }
   0x5   :  { %195 = vmatpush3.bf16.xpose.msra.mxu0 %v71_v6 }
   0x6   :  { %11 = vsyncpa [#allocation4], 0  ;;  %v32_v8 = vld [vmem:[%s317_s2 + $0x18] sm:$0xff]  ;;  %v206_v9 = vld [vmem:[%s316_s1 + $0x8] sm:$0xff]   ;;  %vm154_vm1 = vcmask 64512   ;;  %v169_v50 = vstv %s319_s4  ;;  %s232_s13 = smov [#allocation3]  }
   0x7   :  { %50 = vperm.xlu1 %204, %v32_v8   ;;  %v126_v10 = vld [vmem:[%s318_s3] sm:$0xff]  ;;  %v127_v11 = vld [vmem:[%s318_s3 + $0x8] sm:$0xff]  ;;  %v128_v12 = vld [vmem:[%s318_s3 + $0x10] sm:$0xff]  ;;  %s179_s14 = sshll.u32 %s232_s13, 4  ;;  %vm171_vm2 = vcmask 57344   ;;  %s180_s14 = int_to_ptr.vmem [resolvable:$true] %s179_s14 }
   0x8   :  { %40 = vperm.xlu0 %203, %v30_v7   ;;  %v129_v13 = vld [vmem:[%s318_s3 + $0x18] sm:$0xff]  ;;  %s207_s15 = scalar_lea.vmem %s180_s14, 16  ;;  %s211_s16 = scalar_lea.vmem %s180_s14, 32 }
   0x9   :  { %p208_p0 = scmp.ne.s32.totalorder %s180_s14, %s207_s15  ;;  %p212_p1 = scmp.lt.s32.totalorder %s180_s14, %s180_s14 }
   0xa   :  { %p213_p2 = scmp.lt.s32.totalorder %s211_s16, %s207_s15 }
   0xb   :  { %137 = vperm.xlu1 %204, %v127_v11  }
   0xc   :  { %197 = vmatmul.mubr.msk.bf16.vlgmr.msra.gmra.mrb[0].mxu0 %vm63_vm0, %v206_v9  ;;  %132 = vperm.xlu0 %203, %v126_v10   ;;  %p214_p3 = por %p213_p2, %p212_p1 }
   0xe   :  { %p215_p4 = pnand %p214_p3, %p208_p0 }
   0xf   :  { %147 = vperm.xlu1 %204, %v129_v13  }
  0x10   :  { %142 = vperm.xlu0 %203, %v128_v12  }
  0x81   :  { %v46_v15 = vpop.permute.xlu1 %45 }
  0x83   :  { %v36_v14 = vpop.permute.xlu0 %35 }
  0x86   :  { %v51_v17 = vpop.permute.xlu1 %50 }
  0x87   :  { %v41_v16 = vpop.permute.xlu0 %40 }
  0x8a   :  { %v138_v24 = vpop.permute.xlu1 %137 }
  0x8b   :  { %v133_v19 = vpop.permute.xlu0 %132 }
  0x8e   :  { %v148_v36 = vpop.permute.xlu1 %147 }
  0x8f   :  { %v143_v33 = vpop.permute.xlu0 %142 }
  0xdf   :  { %v198_v18 = vpop.f32.mrb[0].mxu0 }
  0xe0   :  { %v116_v20 = vadd.f32 %v198_v18, %v46_v15  ;;  %v107_v21 = vpop.f32.mrb[1].mxu0 }
  0xe1   :  { %v108_v22 = vadd.f32 %v107_v21, %v36_v14  ;;  %v199_v23 = vpop.f32.mrb[2].mxu0 }
  0xe2   :  { %v119_v25 = vadd.f32 %v199_v23, %v51_v17  ;;  %v110_v26 = vpop.f32.mrb[3].mxu0  ;;  %v124_v27 = vmax.f32 %v116_v20, 0.0 }
  0xe3   :  { %v122_v28 = vmax.f32 %v108_v22, 0.0  ;;  %v111_v29 = vadd.f32 %v110_v26, %v41_v16 }
  0xe4   :  { %v125_v31 = vmax.f32 %v119_v25, 0.0  ;;  %v152_v34 = vmul.f32 %v143_v33, %v124_v27 }
  0xe5   :  { %v150_v30 = vmul.f32 %v133_v19, %v122_v28  ;;  %v123_v32 = vmax.f32 %v111_v29, 0.0 }
  0xe6   :  { %v153_v38 = vmul.f32 %v148_v36, %v125_v31  ;;  %v158_v41 = vsel %vm154_vm1, %v152_v34, 0.0 }
  0xe7   :  { %v151_v35 = vmul.f32 %v138_v24, %v123_v32  ;;  %v155_v37 = vsel %vm154_vm1, %v150_v30, 0.0 }
  0xe8   :  { %v160_v43 = vsel %vm154_vm1, %v153_v38, 0.0 }
  0xe9   :  { %v156_v39 = vsel %vm154_vm1, %v151_v35, 0.0 }
  0xea   :  { %v157_v40 = vadd.f32 %v156_v39, %v155_v37 }
  0xec   :  { %v159_v42 = vadd.f32 %v158_v41, %v157_v40 }
  0xee   :  { %v161_v44 = vadd.f32 %v160_v43, %v159_v42 }
  0xf0   :  { %v162_v45 = vrot.slane %v161_v44, 4 }
  0xf2   :  { %v163_v46 = vadd.f32 %v162_v45, %v161_v44 }
  0xf4   :  { %v164_v47 = vrot.slane %v163_v46, 2 }
  0xf6   :  { %v165_v48 = vadd.f32 %v164_v47, %v163_v46 }
  0xf8   :  { %v166_v49 = vrot.slane %v165_v48, 1 }
  0xfa   :  { %v167_v51 = vadd.f32 %v166_v49, %v165_v48 }
  0xfc   :  { %v170_v52 = vadd.f32 %v169_v50, %v167_v51 }
  0xfe   :  { %172 = vst.msk [vmem:[#allocation3] sm:$0x1] %vm171_vm2, %v170_v52 }
  0xff   :  { %218 = shalt.err (!%p215_p4)
}
 0x100   :  { %s219_s19 = scalar_lea.hbm %s320_s5, 16 }
 0x101   :  { %p220_p5 = scmp.ne.s32.totalorder %s320_s5, %s219_s19  ;;  %p223_p6 = scmp.lt.u32.totalorder %s219_s19, %s320_s5 }
 0x103   :  { %p225_p7 = pnand %p223_p6, %p220_p5 }
 0x105   :  { %228 = shalt.err (!%p225_p7)
}
 0x106   :  { %182 = dma.vmem_to_hbm [thread:$0]  %s180_s14, 16, %s320_s5, [#allocation4]  }
 0x107   :  { %229 = dma.done.wait [#allocation4], 16  }
 0x108   :  { %230 = vsyncadd [#allocation4], 4294967280 }
 0x109   :  { %186 = vsyncpa [#allocation4], 1 }

</bundles_post_ra>
